<compile_context>
chip_gen: v6e
topology: v6e:2x2x1
jax: 0.10.0
libtpu: 0.0.40
codegen_flags: <defaults>
</compile_context>

<pallas_src>
import functools
import math

import jax
import jax.numpy as jnp
from jax.experimental import pallas as pl
from jax.experimental.pallas import tpu as pltpu


def _ffn_kernel(x_ref, w1_ref, b1_ref, w2_ref, b2_ref, o_ref):
    # x_ref : (TM, PH) f32 activations (PH = pack * H, lane-dense)
    # w*_ref: (PH, PH) weights (block-diagonal replicas of the (H,H) conv1d(k=1) weight when
    #         pack > 1), bf16 by default
    # b*_ref: (1, PH) f32 bias (tiled `pack` times)
    # o_ref : (TM, PH) f32 output
    x = x_ref[...]                                              # f32
    h = jnp.dot(x.astype(w1_ref.dtype), w1_ref[...],
                preferred_element_type=jnp.float32) + b1_ref[...]
    g = h * jax.nn.sigmoid(h)                                   # SiLU in f32 (EUP slot)
    y = jnp.dot(g.astype(w2_ref.dtype), w2_ref[...],
                preferred_element_type=jnp.float32) + b2_ref[...]
    # Residual add in f32; o_ref is f32 so the astype is a no-op (lean store path).
    o_ref[...] = (y + x).astype(o_ref.dtype)


def _choose_pack(H, M):
    """Fold `pack` consecutive rows into one lane-dense row (target 256 lanes, then 128)."""
    for target in (256, 128):
        if H < target and target % H == 0 and M % (target // H) == 0:
            return target // H
    return 1


def _choose_row_tile(m_dense, block_rows, bytes_per_row, tile_byte_budget):
    """Pick the row-tile size (multiple of 8, or the full row count)."""
    cap = max(8, min(block_rows, tile_byte_budget // bytes_per_row))
    cap = max(8, (cap // 8) * 8)
    if m_dense <= cap:
        # Fits in one tile.  Split into 2 tiles when comfortably large so v7x's second
        # TensorCore gets work (harmless on single-TC v5e/v6e).
        if m_dense >= 32 and m_dense % 16 == 0:
            return m_dense // 2
        return m_dense                      # single block == full array dim (allowed)
    # Multi-tile: prefer a multiple-of-8 exact divisor (no ragged edge block).
    for tm in range(cap, 7, -8):
        if m_dense % tm == 0:
            return tm
    # No exact divisor: ragged last tile; Pallas bounds the edge DMAs (reads padded,
    # out-of-bounds writes discarded), so no jnp.pad / slice round-trip is needed.
    return cap


def pointwise_feedforward(x, w1, b1, w2, b2, *, block_rows=4096,
                          matmul_dtype=jnp.bfloat16, alias_input=False,
                          tile_byte_budget=4 * 1024 * 1024):
    """x: (B, L, H) f32.  w1, w2: PyTorch Conv1d weights (H, H, 1).  b1, b2: (H,)."""
    B, L, H = x.shape
    M = B * L

    # Conv1d(k=1) on NCL input == per-position linear: out = x @ W[:, :, 0].T + bias
    w1t = jnp.transpose(w1[:, :, 0])        # (H_in, H_out)
    w2t = jnp.transpose(w2[:, :, 0])

    pack = _choose_pack(H, M)
    PH = pack * H

    if pack > 1:
        eye = jnp.eye(pack, dtype=w1t.dtype)
        w1m = jnp.einsum('pq,io->piqo', eye, w1t).reshape(PH, PH)
        w2m = jnp.einsum('pq,io->piqo', eye, w2t).reshape(PH, PH)
        b1r = jnp.tile(b1, pack).reshape(1, PH)
        b2r = jnp.tile(b2, pack).reshape(1, PH)
    else:
        w1m, w2m = w1t, w2t
        b1r = b1.reshape(1, PH)
        b2r = b2.reshape(1, PH)

    w1m = w1m.astype(matmul_dtype)          # tiny, VMEM-resident; halves MXU push on v6e/v7x
    w2m = w2m.astype(matmul_dtype)

    m_dense = M // pack
    x_pack = x.reshape(m_dense, PH)         # row-major fold: same bytes, no data movement

    tm = _choose_row_tile(m_dense, block_rows, PH * x.dtype.itemsize, tile_byte_budget)
    grid = (pl.cdiv(m_dense, tm),)

    cost = pl.CostEstimate(
        flops=4 * m_dense * PH * PH + 5 * M * H,        # block-diag padding is real MXU work
        transcendentals=M * H,
        bytes_accessed=2 * m_dense * PH * x.dtype.itemsize
        + 2 * PH * PH * jnp.dtype(matmul_dtype).itemsize
        + 2 * PH * b1r.dtype.itemsize,
    )

    out_pack = pl.pallas_call(
        _ffn_kernel,
        out_shape=jax.ShapeDtypeStruct((m_dense, PH), x.dtype),
        grid_spec=pl.GridSpec(
            grid=grid,
            in_specs=[
                pl.BlockSpec((tm, PH), lambda i: (i, 0)),   # activations: tiled rows
                pl.BlockSpec((PH, PH), lambda i: (0, 0)),   # weights: VMEM-resident
                pl.BlockSpec((1, PH), lambda i: (0, 0)),
                pl.BlockSpec((PH, PH), lambda i: (0, 0)),
                pl.BlockSpec((1, PH), lambda i: (0, 0)),
            ],
            out_specs=pl.BlockSpec((tm, PH), lambda i: (i, 0)),
        ),
        # Row tiles are independent -> "parallel" lets v7x shard them across its 2 TCs.
        # vmem_limit_bytes=48 MiB: raises v5e's 16 MiB scoped default for the larger tiles,
        # stays under v7x's 64 MiB per-TC physical VMEM (actual use ~<30 MiB).
        compiler_params=pltpu.CompilerParams(
            dimension_semantics=("parallel",),
            vmem_limit_bytes=48 * 1024 * 1024,
        ),
        # Opt-in only: aliasing a non-donated jit input makes XLA insert a defensive copy
        # (an extra HBM pass) which costs more than the footprint saving on this HBM-bound op.
        input_output_aliases=({0: 0} if alias_input else {}),
        cost_estimate=cost,
    )(x_pack, w1m, b1r, w2m, b2r)

    return out_pack.reshape(B, L, H)


def xavier_uniform_conv1d_k1(key, out_ch, in_ch, dtype=jnp.float32):
    # nn.init.xavier_uniform_ on Conv1d weight (out, in, 1): fan_in=in, fan_out=out
    bound = math.sqrt(6.0 / (in_ch + out_ch))
    return jax.random.uniform(key, (out_ch, in_ch, 1), dtype=dtype,
                              minval=-bound, maxval=bound)


def _reference(x, w1, b1, w2, b2, matmul_dtype):
    """Plain-JAX reference with matching matmul precision."""
    B, L, H = x.shape
    x2 = x.reshape(B * L, H)
    w1t = jnp.transpose(w1[:, :, 0]).astype(matmul_dtype)
    w2t = jnp.transpose(w2[:, :, 0]).astype(matmul_dtype)
    h = jnp.dot(x2.astype(matmul_dtype), w1t, preferred_element_type=jnp.float32) + b1
    g = h * jax.nn.sigmoid(h)
    y = jnp.dot(g.astype(matmul_dtype), w2t, preferred_element_type=jnp.float32) + b2
    return (y + x2).reshape(B, L, H)


if __name__ == "__main__":
    key = jax.random.PRNGKey(0)

    def make_case(k, B, L, H, zero_bias):
        kx, kw1, kw2, kb1, kb2 = jax.random.split(k, 5)
        x = jax.random.normal(kx, (B, L, H), dtype=jnp.float32)
        w1 = xavier_uniform_conv1d_k1(kw1, H, H)
        w2 = xavier_uniform_conv1d_k1(kw2, H, H)
        if zero_bias:   # module's _init_weights zeros the Conv1d biases
            b1 = jnp.zeros((H,), jnp.float32)
            b2 = jnp.zeros((H,), jnp.float32)
        else:
            b1 = 0.1 * jax.random.normal(kb1, (H,), jnp.float32)
            b2 = 0.1 * jax.random.normal(kb2, (H,), jnp.float32)
        return x, w1, b1, w2, b2

    k1, k2, k3, k4, k5 = jax.random.split(key, 5)
    cases = [
        # 1) module-sized config (hidden_units=32, maxlen=8, batch=2); aliased HBM output
        (make_case(k1, 2, 8, 32, True), {"alias_input": True}),
        # 2) multi-tile grid with exact divisor (pack=8 -> m_dense=32, tm=8, grid=4)
        (make_case(k2, 4, 64, 32, False), {"block_rows": 8}),
        # 3) ragged last tile: pack=8 -> m_dense=15, tm=8, grid=2 (edge block bounded by Pallas)
        (make_case(k3, 3, 40, 32, False), {"block_rows": 8}),
        # 4) H=128: packs to PH=256, megacore 2-tile split branch
        (make_case(k4, 2, 64, 128, False), {}),
        # 5) H=160: no packing (PH not a multiple of 128), 2-tile split branch
        (make_case(k5, 2, 16, 160, False), {}),
    ]

    for (x, w1, b1, w2, b2), kw in cases:
        fn = jax.jit(functools.partial(pointwise_feedforward, **kw))
        out = fn(x, w1, b1, w2, b2)
        jax.block_until_ready(out)
        assert out.shape == x.shape
        # matched-precision reference (bf16 matmul inputs, f32 accumulate/SiLU/residual)
        ref = _reference(x, w1, b1, w2, b2, jnp.bfloat16)
        assert jnp.allclose(out, ref, atol=2e-4, rtol=2e-4), "mismatch vs matched reference"
        # loose sanity check vs full-f32 semantics of the PyTorch module
        ref32 = _reference(x, w1, b1, w2, b2, jnp.float32)
        assert jnp.allclose(out, ref32, atol=5e-2, rtol=5e-2), "mismatch vs f32 reference"

    print("KERNEL_OK")
</pallas_src>

<mosaic_0001>
module attributes {stable_mosaic.version = 11 : i64} {
  func.func @_ffn_kernel(%arg0: i32, %arg1: memref<2x256xf32, #tpu.memory_space<vmem>>, %arg2: memref<256x256xbf16, #tpu.memory_space<vmem>>, %arg3: memref<1x256xf32, #tpu.memory_space<vmem>>, %arg4: memref<256x256xbf16, #tpu.memory_space<vmem>>, %arg5: memref<1x256xf32, #tpu.memory_space<vmem>>, %arg6: memref<2x256xf32, #tpu.memory_space<vmem>>) attributes {dimension_semantics = [#tpu.dimension_semantics<parallel>], iteration_bounds = array<i64: 1>, scalar_prefetch = 0 : i64, scratch_operands = 0 : i64, tpu.core_type = #tpu.core_type<tc>, window_params = [{transform_indices = @transform_0, window_bounds = array<i64: 2, 256>}, {pipeline_mode = #tpu.pipeline_mode<synchronous>, transform_indices = @transform_1, window_bounds = array<i64: 256, 256>}, {pipeline_mode = #tpu.pipeline_mode<synchronous>, transform_indices = @transform_2, window_bounds = array<i64: 1, 256>}, {pipeline_mode = #tpu.pipeline_mode<synchronous>, transform_indices = @transform_3, window_bounds = array<i64: 256, 256>}, {pipeline_mode = #tpu.pipeline_mode<synchronous>, transform_indices = @transform_4, window_bounds = array<i64: 1, 256>}, {transform_indices = @transform_5, window_bounds = array<i64: 2, 256>}]} {
    %c0 = arith.constant 0 : index
    %c0_0 = arith.constant 0 : index
    %0 = vector.load %arg1[%c0, %c0_0] : memref<2x256xf32, #tpu.memory_space<vmem>>, vector<2x256xf32>
    %1 = arith.truncf %0 : vector<2x256xf32> to vector<2x256xbf16>
    %c0_1 = arith.constant 0 : index
    %c0_2 = arith.constant 0 : index
    %2 = vector.load %arg2[%c0_1, %c0_2] : memref<256x256xbf16, #tpu.memory_space<vmem>>, vector<256x256xbf16>
    %cst = arith.constant dense<0.000000e+00> : vector<2x256xf32>
    %3 = tpu.matmul %1, %2, %cst {dimension_numbers = #tpu.dot_dimension_numbers<[1], [0], [0], [1], [0, 0, 1, 1], [], []>} : vector<2x256xbf16>, vector<256x256xbf16>, vector<2x256xf32> -> vector<2x256xf32>
    %c0_3 = arith.constant 0 : index
    %c0_4 = arith.constant 0 : index
    %4 = vector.load %arg3[%c0_3, %c0_4] : memref<1x256xf32, #tpu.memory_space<vmem>>, vector<1x256xf32>
    %5 = vector.broadcast %4 : vector<1x256xf32> to vector<2x256xf32>
    %6 = arith.addf %3, %5 : vector<2x256xf32>
    %7 = arith.negf %6 : vector<2x256xf32>
    %8 = math.exp %7 : vector<2x256xf32>
    %cst_5 = arith.constant 1.000000e+00 : f32
    %9 = vector.broadcast %cst_5 : f32 to vector<2x256xf32>
    %10 = arith.addf %9, %8 : vector<2x256xf32>
    %11 = arith.divf %9, %10 : vector<2x256xf32>
    %12 = arith.mulf %6, %11 : vector<2x256xf32>
    %13 = arith.truncf %12 : vector<2x256xf32> to vector<2x256xbf16>
    %c0_6 = arith.constant 0 : index
    %c0_7 = arith.constant 0 : index
    %14 = vector.load %arg4[%c0_6, %c0_7] : memref<256x256xbf16, #tpu.memory_space<vmem>>, vector<256x256xbf16>
    %cst_8 = arith.constant dense<0.000000e+00> : vector<2x256xf32>
    %15 = tpu.matmul %13, %14, %cst_8 {dimension_numbers = #tpu.dot_dimension_numbers<[1], [0], [0], [1], [0, 0, 1, 1], [], []>} : vector<2x256xbf16>, vector<256x256xbf16>, vector<2x256xf32> -> vector<2x256xf32>
    %c0_9 = arith.constant 0 : index
    %c0_10 = arith.constant 0 : index
    %16 = vector.load %arg5[%c0_9, %c0_10] : memref<1x256xf32, #tpu.memory_space<vmem>>, vector<1x256xf32>
    %17 = vector.broadcast %16 : vector<1x256xf32> to vector<2x256xf32>
    %18 = arith.addf %15, %17 : vector<2x256xf32>
    %19 = arith.addf %18, %0 : vector<2x256xf32>
    %c0_11 = arith.constant 0 : index
    %c0_12 = arith.constant 0 : index
    %20 = vector.load %arg6[%c0_11, %c0_12] : memref<2x256xf32, #tpu.memory_space<vmem>>, vector<2x256xf32>
    tpu.vector_store %arg6[%c0_11, %c0_12], %19 {strides = array<i32>} : memref<2x256xf32, #tpu.memory_space<vmem>>, vector<2x256xf32>,
    return
  }
  func.func @transform_0(%arg0: i32) -> (i32, i32) {
    %c0_i32 = arith.constant 0 : i32
    %c0_i32_0 = arith.constant 0 : i32
    return %arg0, %c0_i32 : i32, i32
  }
  func.func @transform_1(%arg0: i32) -> (i32, i32) {
    %c0_i32 = arith.constant 0 : i32
    %c0_i32_0 = arith.constant 0 : i32
    %c0_i32_1 = arith.constant 0 : i32
    return %c0_i32, %c0_i32_0 : i32, i32
  }
  func.func @transform_2(%arg0: i32) -> (i32, i32) {
    %c0_i32 = arith.constant 0 : i32
    %c0_i32_0 = arith.constant 0 : i32
    %c0_i32_1 = arith.constant 0 : i32
    return %c0_i32, %c0_i32_0 : i32, i32
  }
  func.func @transform_3(%arg0: i32) -> (i32, i32) {
    %c0_i32 = arith.constant 0 : i32
    %c0_i32_0 = arith.constant 0 : i32
    %c0_i32_1 = arith.constant 0 : i32
    return %c0_i32, %c0_i32_0 : i32, i32
  }
  func.func @transform_4(%arg0: i32) -> (i32, i32) {
    %c0_i32 = arith.constant 0 : i32
    %c0_i32_0 = arith.constant 0 : i32
    %c0_i32_1 = arith.constant 0 : i32
    return %c0_i32, %c0_i32_0 : i32, i32
  }
  func.func @transform_5(%arg0: i32) -> (i32, i32) {
    %c0_i32 = arith.constant 0 : i32
    %c0_i32_0 = arith.constant 0 : i32
    return %arg0, %c0_i32 : i32, i32
  }
}

</mosaic_0001>

<bundles_post_ra>
// kernel: tile.13
= control target key start
LH: loop header
LB: loop body
LE: loop exit
PB: predicated region body
PF: predicated region fallthrough
CT: control target
= control target key end

     0   :  { %s22_s0 = inlined_call_operand.vmem [shape: f32[32], index: 0, kind: input, shape index: {}]   ;;  %s23_s1 = inlined_call_operand.vmem [shape: f32[8,32], index: 1, kind: output, shape index: {}]  }
   0x1   :  { %v4_v0 = vld [vmem:[%s22_s0] ss:$0 sm:$0xff] }
   0x2   :  { %5 = vst [vmem:[%s23_s1] sm:$0xff] %v4_v0 }

// kernel: tile.14
= control target key start
LH: loop header
LB: loop body
LE: loop exit
PB: predicated region body
PF: predicated region fallthrough
CT: control target
= control target key end

     0   :  { %s7_s6 = smov 3  ;;  %s14_s9 = smov 3  ;;  %vm4_vm0 = vcmask 261120   ;;  %vm11_vm1 = vcmask 1048320   ;;  %vm18_vm2 = vcmask 785920   ;;  %vm25_vm3 = vcmask 523520   ;;  %s79_s0 = inlined_call_operand.vmem [shape: f32[8,32], index: 0, kind: input, shape index: {}]   ;;  %s80_s1 = inlined_call_operand.vmem [shape: f32[1,256], index: 1, kind: output, shape index: {}]  }
   0x1   :  { %v41_v0 = vld [vmem:[%s79_s0 + $0x3] ss:$4 sm:%s7_s6]   ;;  %s48_s10 = smov 96   ;;  %s21_s11 = smov 3  ;;  %v42_v1 = vld [vmem:[%s79_s0 + $0x2] ss:$4 sm:%s14_s9]  }
   0x2   :  { %9 = vrot.lane.b32.xlu0 %v41_v0, %s48_s10  ;;  %v43_v2 = vld [vmem:[%s79_s0 + $0x1] ss:$4 sm:%s21_s11]   ;;  %s2_s16 = smov 3  ;;  %s49_s17 = smov 32  }
   0x3   :  { %23 = vrot.lane.b32.xlu1 %v43_v2, %s49_s17  ;;  %v3_v3 = vld [vmem:[%s79_s0] ss:$4 sm:%s2_s16]   ;;  %s50_s0 = smov 64  }
   0x4   :  { %5 = vst.msk [vmem:[#allocation0] ss:$8 sm:$0x3] %vm4_vm0, %v3_v3  }
   0x6   :  { %16 = vrot.lane.b32.xlu0 %v42_v1, %s50_s0 }
  0x74   :  { %v10_v4 = vpop.permute.xlu0 %9  }
  0x75   :  { %12 = vst.msk [vmem:[#allocation0] ss:$8 sm:$0x3] %vm11_vm1, %v10_v4   ;;  %v24_v5 = vpop.permute.xlu1 %23  }
  0x78   :  { %v17_v6 = vpop.permute.xlu0 %16  }
  0x79   :  { %19 = vst.msk [vmem:[#allocation0] ss:$8 sm:$0x3] %vm18_vm2, %v17_v6  }
  0x7a   :  { %26 = vst.msk [vmem:[#allocation0] ss:$8 sm:$0x3] %vm25_vm3, %v24_v5  }
  0x81   :  { %v31_v7 = vld [vmem:[#allocation0] sm:$0x1]  ;;  %v36_v8 = vld [vmem:[#allocation0 + $0x8] sm:$0x1] }
  0x82   :  { %34 = vst [vmem:[%s80_s1] sm:$0x1] %v31_v7  ;;  %44 = vst [vmem:[%s80_s1 + $0x1] sm:$0x1] %v36_v8 }

// kernel: pointwise_feedforward.1
= control target key start
LH: loop header
LB: loop body
LE: loop exit
PB: predicated region body
PF: predicated region fallthrough
CT: control target
= control target key end

     0   :  { %s976_s1 = inlined_call_operand.vmem [shape: bf16[256,256], index: 1, kind: input, shape index: {}]   ;;  %s977_s0 = inlined_call_operand.vmem [shape: f32[2,256], index: 0, kind: input, shape index: {}, may-alias: {0,5}]   ;;  %s978_s3 = inlined_call_operand.vmem [shape: bf16[256,256], index: 3, kind: input, shape index: {}]   ;;  %s979_s2 = inlined_call_operand.vmem [shape: f32[1,256], index: 2, kind: input, shape index: {}]   ;;  %s980_s4 = inlined_call_operand.vmem [shape: f32[1,256], index: 4, kind: input, shape index: {}]   ;;  %s981_s5 = inlined_call_operand.vmem [shape: f32[2,256], index: 5, kind: output, shape index: {}, may-alias: {0,5}]  }
   0x1   :  { %v626_v0 = vld [vmem:[%s976_s1 + $0x74] ss:$8 sps:$4 sm:$0xff]   ;;  %v628_v1 = vld [vmem:[%s976_s1 + $0x70] ss:$8 sps:$4 sm:$0xff]   ;;  %v629_v2 = vld [vmem:[%s976_s1 + $0x64] ss:$8 sps:$4 sm:$0xff]  }
   0x2   :  { %238 = vmatprep.subr.bf16.mxu0 %v626_v0  ;;  %v631_v3 = vld [vmem:[%s976_s1 + $0x60] ss:$8 sps:$4 sm:$0xff]   ;;  %v632_v4 = vld [vmem:[%s976_s1 + $0x54] ss:$8 sps:$4 sm:$0xff]   ;;  %v634_v5 = vld [vmem:[%s976_s1 + $0x50] ss:$8 sps:$4 sm:$0xff]  }
   0x3   :  { %239 = vmatpush1.bf16.msra.mxu0 %v628_v1  ;;  %v635_v6 = vld [vmem:[%s976_s1 + $0x44] ss:$8 sps:$4 sm:$0xff]   ;;  %v637_v7 = vld [vmem:[%s976_s1 + $0x40] ss:$8 sps:$4 sm:$0xff]   ;;  %v638_v8 = vld [vmem:[%s976_s1 + $0x34] ss:$8 sps:$4 sm:$0xff]  }
   0x4   :  { %240 = vmatprep.subr.bf16.mxu0 %v629_v2  ;;  %v640_v9 = vld [vmem:[%s976_s1 + $0x30] ss:$8 sps:$4 sm:$0xff]   ;;  %v641_v10 = vld [vmem:[%s976_s1 + $0x24] ss:$8 sps:$4 sm:$0xff]   ;;  %v643_v11 = vld [vmem:[%s976_s1 + $0x20] ss:$8 sps:$4 sm:$0xff]  }
   0x5   :  { %v644_v12 = vld [vmem:[%s976_s1 + $0x14] ss:$8 sps:$4 sm:$0xff]   ;;  %v646_v13 = vld [vmem:[%s976_s1 + $0x10] ss:$8 sps:$4 sm:$0xff]   ;;  %v647_v18 = vld [vmem:[%s976_s1 + $0x4] ss:$8 sps:$4 sm:$0xff]  }
   0x6   :  { %v805_v14 = vld.sshfl [vmem:[%s977_s0] sm:$0x33 pattern:$0x76325410]  ;;  %v674_v16 = vld [vmem:[%s978_s3 + $0x74] ss:$8 sps:$4 sm:$0xff]  }
   0x7   :  { %241 = vmatpush1.bf16.msra.mxu0 %v631_v3  ;;  %v809_v15 = vcombine.high %v805_v14, %v805_v14  ;;  %v676_v17 = vld [vmem:[%s978_s3 + $0x70] ss:$8 sps:$4 sm:$0xff]   ;;  %499 = vmatprep.subr.bf16.mxu1 %v674_v16  ;;  %v677_v20 = vld [vmem:[%s978_s3 + $0x64] ss:$8 sps:$4 sm:$0xff]   ;;  %v679_v21 = vld [vmem:[%s978_s3 + $0x60] ss:$8 sps:$4 sm:$0xff]   ;;  %v32_v47 = vpack.c.bf16 %v805_v14, %v805_v14 }
   0x8   :  { %242 = vmatprep.subr.bf16.mxu0 %v632_v4  ;;  %500 = vmatpush1.bf16.msra.mxu1 %v676_v17  ;;  %v680_v22 = vld [vmem:[%s978_s3 + $0x54] ss:$8 sps:$4 sm:$0xff]   ;;  %v649_v23 = vld [vmem:[%s976_s1] ss:$8 sps:$4 sm:$0xff]   ;;  %v652_v25 = vld [vmem:[%s976_s1 + $0xf0] ss:$8 sps:$4 sm:$0xff]   ;;  %v68_v4 = vlaneseq }
   0x9   :  { %v33_v19 = vpack.c.bf16 %v809_v15, %v809_v15  ;;  %501 = vmatprep.subr.bf16.mxu1 %v677_v20  ;;  %v650_v24 = vld [vmem:[%s976_s1 + $0xf4] ss:$8 sps:$4 sm:$0xff]   ;;  %v682_v26 = vld [vmem:[%s978_s3 + $0x50] ss:$8 sps:$4 sm:$0xff]   ;;  %v653_v27 = vld [vmem:[%s976_s1 + $0xe4] ss:$8 sps:$4 sm:$0xff]  }
   0xa   :  { %v683_v28 = vld [vmem:[%s978_s3 + $0x44] ss:$8 sps:$4 sm:$0xff]   ;;  %v685_v29 = vld [vmem:[%s978_s3 + $0x40] ss:$8 sps:$4 sm:$0xff]   ;;  %v686_v30 = vld [vmem:[%s978_s3 + $0x34] ss:$8 sps:$4 sm:$0xff]  }
   0xb   :  { %243 = vmatpush1.bf16.msra.mxu0 %v634_v5  ;;  %270 = vmatprep.mubr.bf16.mxu0 %v33_v19  ;;  %v655_v31 = vld [vmem:[%s976_s1 + $0xe0] ss:$8 sps:$4 sm:$0xff]   ;;  %v656_v32 = vld [vmem:[%s976_s1 + $0xd4] ss:$8 sps:$4 sm:$0xff]   ;;  %v688_v33 = vld [vmem:[%s978_s3 + $0x30] ss:$8 sps:$4 sm:$0xff]  }
   0xc   :  { %244 = vmatprep.subr.bf16.mxu0 %v635_v6  ;;  %502 = vmatpush1.bf16.msra.mxu1 %v679_v21  ;;  %v689_v34 = vld [vmem:[%s978_s3 + $0x24] ss:$8 sps:$4 sm:$0xff]   ;;  %v658_v35 = vld [vmem:[%s976_s1 + $0xd0] ss:$8 sps:$4 sm:$0xff]   ;;  %v691_v37 = vld [vmem:[%s978_s3 + $0x20] ss:$8 sps:$4 sm:$0xff]  }
   0xd   :  { %503 = vmatprep.subr.bf16.mxu1 %v680_v22  ;;  %v659_v36 = vld [vmem:[%s976_s1 + $0xc4] ss:$8 sps:$4 sm:$0xff]   ;;  %v661_v38 = vld [vmem:[%s976_s1 + $0xc0] ss:$8 sps:$4 sm:$0xff]   ;;  %v662_v39 = vld [vmem:[%s976_s1 + $0xb4] ss:$8 sps:$4 sm:$0xff]  }
   0xe   :  { %v664_v40 = vld [vmem:[%s976_s1 + $0xb0] ss:$8 sps:$4 sm:$0xff]   ;;  %v665_v41 = vld [vmem:[%s976_s1 + $0xa4] ss:$8 sps:$4 sm:$0xff]   ;;  %v667_v42 = vld [vmem:[%s976_s1 + $0xa0] ss:$8 sps:$4 sm:$0xff]  }
   0xf   :  { %245 = vmatpush1.bf16.msra.mxu0 %v637_v7  ;;  %v668_v43 = vld [vmem:[%s976_s1 + $0x94] ss:$8 sps:$4 sm:$0xff]   ;;  %v670_v44 = vld [vmem:[%s976_s1 + $0x90] ss:$8 sps:$4 sm:$0xff]   ;;  %v671_v45 = vld [vmem:[%s976_s1 + $0x84] ss:$8 sps:$4 sm:$0xff]  }
  0x10   :  { %246 = vmatprep.subr.bf16.mxu0 %v638_v8  ;;  %504 = vmatpush1.bf16.msra.mxu1 %v682_v26  ;;  %v673_v46 = vld [vmem:[%s976_s1 + $0x80] ss:$8 sps:$4 sm:$0xff]   ;;  %v692_v48 = vld [vmem:[%s978_s3 + $0x14] ss:$8 sps:$4 sm:$0xff]   ;;  %v694_v49 = vld [vmem:[%s978_s3 + $0x10] ss:$8 sps:$4 sm:$0xff]  }
  0x11   :  { %505 = vmatprep.subr.bf16.mxu1 %v683_v28  ;;  %v695_v50 = vld [vmem:[%s978_s3 + $0x4] ss:$8 sps:$4 sm:$0xff]   ;;  %v697_v51 = vld [vmem:[%s978_s3] ss:$8 sps:$4 sm:$0xff]   ;;  %v698_v52 = vld [vmem:[%s978_s3 + $0xf4] ss:$8 sps:$4 sm:$0xff]  }
  0x12   :  { %v700_v53 = vld [vmem:[%s978_s3 + $0xf0] ss:$8 sps:$4 sm:$0xff]   ;;  %v701_v54 = vld [vmem:[%s978_s3 + $0xe4] ss:$8 sps:$4 sm:$0xff]   ;;  %v703_v55 = vld [vmem:[%s978_s3 + $0xe0] ss:$8 sps:$4 sm:$0xff]  }
  0x13   :  { %247 = vmatpush1.bf16.msra.mxu0 %v640_v9  ;;  %v704_v56 = vld [vmem:[%s978_s3 + $0xd4] ss:$8 sps:$4 sm:$0xff]   ;;  %v706_v57 = vld [vmem:[%s978_s3 + $0xd0] ss:$8 sps:$4 sm:$0xff]   ;;  %v707_v58 = vld [vmem:[%s978_s3 + $0xc4] ss:$8 sps:$4 sm:$0xff]  }
  0x14   :  { %248 = vmatprep.subr.bf16.mxu0 %v641_v10  ;;  %506 = vmatpush1.bf16.msra.mxu1 %v685_v29  ;;  %v709_v59 = vld [vmem:[%s978_s3 + $0xc0] ss:$8 sps:$4 sm:$0xff]   ;;  %v710_v60 = vld [vmem:[%s978_s3 + $0xb4] ss:$8 sps:$4 sm:$0xff]   ;;  %v712_v61 = vld [vmem:[%s978_s3 + $0xb0] ss:$8 sps:$4 sm:$0xff]  }
  0x15   :  { %507 = vmatprep.subr.bf16.mxu1 %v686_v30  ;;  %v713_v62 = vld [vmem:[%s978_s3 + $0xa4] ss:$8 sps:$4 sm:$0xff]   ;;  %v715_v63 = vld [vmem:[%s978_s3 + $0xa0] ss:$8 sps:$4 sm:$0xff]   ;;  %v716_v0 = vld [vmem:[%s978_s3 + $0x94] ss:$8 sps:$4 sm:$0xff]  }
  0x16   :  { %v718_v1 = vld [vmem:[%s978_s3 + $0x90] ss:$8 sps:$4 sm:$0xff]   ;;  %v719_v2 = vld [vmem:[%s978_s3 + $0x84] ss:$8 sps:$4 sm:$0xff]   ;;  %v721_v3 = vld [vmem:[%s978_s3 + $0x80] ss:$8 sps:$4 sm:$0xff]  }
  0x17   :  { %249 = vmatpush1.bf16.msra.mxu0 %v643_v11  ;;  %v69_v5 = vshrl.u32 %v68_v4, 7  ;;  %v66_v7 = vld [vmem:[%s979_s2] sm:$0x3] }
  0x18   :  { %250 = vmatprep.subr.bf16.mxu0 %v644_v12  ;;  %508 = vmatpush1.bf16.msra.mxu1 %v688_v33 }
  0x19   :  { %509 = vmatprep.subr.bf16.mxu1 %v689_v34  ;;  %v70_v6 = vsub.s32 0, %v69_v5  ;;  %v74_v8 = vsub.s32 1, %v69_v5 }
  0x1b   :  { %251 = vmatpush1.bf16.msra.mxu0 %v646_v13  ;;  %v71_v9 = vrot.slane %v66_v7, %v70_v6  ;;  %v75_v10 = vrot.slane %v66_v7, %v74_v8 }
  0x1c   :  { %252 = vmatprep.subr.bf16.mxu0 %v647_v18  ;;  %510 = vmatpush1.bf16.msra.mxu1 %v691_v37 }
  0x1d   :  { %511 = vmatprep.subr.bf16.mxu1 %v692_v48 }
  0x1f   :  { %253 = vmatpush1.bf16.msra.mxu0 %v649_v23 }
  0x20   :  { %254 = vmatprep.subr.bf16.mxu0 %v650_v24  ;;  %512 = vmatpush1.bf16.msra.mxu1 %v694_v49 }
  0x21   :  { %513 = vmatprep.subr.bf16.mxu1 %v695_v50 }
  0x23   :  { %255 = vmatpush2.bf16.msra.mxu0 %v652_v25 }
  0x24   :  { %256 = vmatprep.subr.bf16.mxu0 %v653_v27  ;;  %514 = vmatpush1.bf16.msra.mxu1 %v697_v51 }
  0x25   :  { %515 = vmatprep.subr.bf16.mxu1 %v698_v52 }
  0x27   :  { %257 = vmatpush2.bf16.msra.mxu0 %v655_v31  ;;  %v327_v31 = vld [vmem:[%s980_s4] sm:$0x3] }
  0x28   :  { %258 = vmatprep.subr.bf16.mxu0 %v656_v32  ;;  %516 = vmatpush2.bf16.msra.mxu1 %v700_v53  ;;  %v332_v32 = vrot.slane %v327_v31, %v70_v6  ;;  %v336_v33 = vrot.slane %v327_v31, %v74_v8 }
  0x29   :  { %517 = vmatprep.subr.bf16.mxu1 %v701_v54 }
  0x2b   :  { %259 = vmatpush2.bf16.msra.mxu0 %v658_v35 }
  0x2c   :  { %260 = vmatprep.subr.bf16.mxu0 %v659_v36  ;;  %518 = vmatpush2.bf16.msra.mxu1 %v703_v55 }
  0x2d   :  { %519 = vmatprep.subr.bf16.mxu1 %v704_v56 }
  0x2f   :  { %261 = vmatpush2.bf16.msra.mxu0 %v661_v38 }
  0x30   :  { %262 = vmatprep.subr.bf16.mxu0 %v662_v39  ;;  %520 = vmatpush2.bf16.msra.mxu1 %v706_v57 }
  0x31   :  { %521 = vmatprep.subr.bf16.mxu1 %v707_v58 }
  0x33   :  { %263 = vmatpush2.bf16.msra.mxu0 %v664_v40 }
  0x34   :  { %264 = vmatprep.subr.bf16.mxu0 %v665_v41  ;;  %522 = vmatpush2.bf16.msra.mxu1 %v709_v59 }
  0x35   :  { %523 = vmatprep.subr.bf16.mxu1 %v710_v60 }
  0x37   :  { %265 = vmatpush2.bf16.msra.mxu0 %v667_v42 }
  0x38   :  { %266 = vmatprep.subr.bf16.mxu0 %v668_v43  ;;  %524 = vmatpush2.bf16.msra.mxu1 %v712_v61 }
  0x39   :  { %525 = vmatprep.subr.bf16.mxu1 %v713_v62 }
  0x3b   :  { %267 = vmatpush2.bf16.msra.mxu0 %v670_v44 }
  0x3c   :  { %268 = vmatprep.subr.bf16.mxu0 %v671_v45  ;;  %526 = vmatpush2.bf16.msra.mxu1 %v715_v63 }
  0x3d   :  { %527 = vmatprep.subr.bf16.mxu1 %v716_v0 }
  0x3f   :  { %269 = vmatpush2.bf16.msra.mxu0 %v673_v46 }
  0x40   :  { %528 = vmatpush2.bf16.msra.mxu1 %v718_v1 }
  0x41   :  { %529 = vmatprep.subr.bf16.mxu1 %v719_v2 }
  0x42   :  { %271 = vmatmul.mubr.bf16.vlgmr.msra.gmra.mxu0 %v32_v47 }
  0x44   :  { %530 = vmatpush2.bf16.msra.mxu1 %v721_v3 }
 0x102   :  { %v272_v11 = vpop.f32.mrf.mxu0 }
 0x103   :  { %v273_v12 = vadd.f32 %v272_v11, %v71_v9 }
 0x104   :  { %v274_v13 = vpop.f32.mrf.mxu0 }
 0x105   :  { %v591_v16 = vmul.f32 -1.442695, %v273_v12  ;;  %v275_v17 = vadd.f32 %v274_v13, %v75_v10 }
 0x106   :  { %v276_v18 = vpop.f32.mrf.mxu0 }
 0x107   :  { %722 = vpow2.f32 %v591_v16  ;;  %v592_v19 = vmul.f32 -1.442695, %v275_v17 }
 0x108   :  { %v277_v20 = vpop.f32.mrf.mxu0 }
 0x109   :  { %724 = vpow2.f32 %v592_v19 }
 0x114   :  { %v723_v21 = vpop.eup %722 }
 0x115   :  { %v285_v22 = vadd.f32 1.0, %v723_v21 }
 0x116   :  { %v725_v23 = vpop.eup %724 }
 0x117   :  { %726 = vrcp.f32 %v285_v22  ;;  %v286_v24 = vadd.f32 1.0, %v725_v23 }
 0x119   :  { %728 = vrcp.f32 %v286_v24 }
 0x124   :  { %v727_v25 = vpop.eup %726 }
 0x125   :  { %v291_v27 = vmul.f32 %v727_v25, %v273_v12 }
 0x126   :  { %v729_v26 = vpop.eup %728 }
 0x127   :  { %v292_v28 = vmul.f32 %v729_v26, %v275_v17  ;;  %v293_v30 = vpack.c.bf16 %v291_v27, %v291_v27 }
 0x129   :  { %v294_v29 = vpack.c.bf16 %v292_v28, %v292_v28 }
 0x12b   :  { %531 = vmatprep.mubr.bf16.mxu1 %v294_v29 }
 0x12c   :  { %532 = vmatmul.mubr.bf16.vlgmr.msra.gmra.mxu1 %v293_v30 }
 0x1ec   :  { %v533_v34 = vpop.f32.mrf.mxu1 }
 0x1ed   :  { %v534_v35 = vadd.f32 %v533_v34, %v332_v32 }
 0x1ee   :  { %v535_v36 = vpop.f32.mrf.mxu1 }
 0x1ef   :  { %v536_v37 = vadd.f32 %v535_v36, %v336_v33  ;;  %v540_v39 = vadd.f32 %v805_v14, %v534_v35 }
 0x1f0   :  { %v537_v38 = vpop.f32.mrf.mxu1 }
 0x1f1   :  { %v541_v40 = vadd.f32 %v536_v37, %v809_v15 }
 0x1f2   :  { %v538_v41 = vpop.f32.mrf.mxu1 }
 0x1f3   :  { %v544_v42 = vcombine.low %v540_v39, %v541_v40 }
 0x1f5   :  { %625 = vst.sshfl [vmem:[%s981_s5] sm:$0x33 pattern:$0x76325410] %v544_v42 }

</bundles_post_ra>
